<compile_context>
chip_gen: v7x
topology: tpu7x:2x2x1
jax: 0.10.0
libtpu: 0.0.40
codegen_flags: <defaults>
</compile_context>

<pallas_src>
import functools
import math

import jax
import jax.numpy as jnp
from jax import lax
from jax.experimental import pallas as pl
from jax.experimental.pallas import tpu as pltpu


# ----------------------------------------------------------------------------
# Pallas kernel: fused depthwise(KxK) + pointwise(1x1) conv, one batch element
# per grid step.  All real work is a single MXU matmul with the spatial axis
# on the 128-lane dimension.
# ----------------------------------------------------------------------------
def _sepconv_kernel(x_ref, wf_ref, o_ref, xpf_ref, slab_ref, *,
                    K, dilation, pad_beg, H, W, Wp, Ncols, Cin):
    # x_ref:    (1, Cin, H*W)        input image, NCHW with spatial flattened
    # wf_ref:   (Cout, K*K*Cin)      fused depthwise*pointwise weights
    # o_ref:    (1, Cout, Ncols)     Ncols = Hf * Wp  (full-res rows, padded width)
    # xpf_ref:  (Cin, Hp*Wp + pad)   zero-padded image, spatially flattened
    # slab_ref: (K*K*Cin, Ncols)     im2col slab

    # ---- in-kernel "same" padding: zero-fill scratch, copy each image row ---
    xpf_ref[...] = jnp.zeros_like(xpf_ref)
    xv = x_ref[0]                                            # (Cin, H*W)
    for h in range(H):
        dst = (pad_beg + h) * Wp + pad_beg
        xpf_ref[:, dst:dst + W] = xv[:, h * W:(h + 1) * W]

    # ---- im2col: each tap is a contiguous window of the flat padded image ---
    # Row ordering (kh, kw, ci) matches the fused-weight layout built in the
    # wrapper.
    for kh in range(K):
        for kw in range(K):
            tap = kh * K + kw
            off = dilation * (kh * Wp + kw)
            slab_ref[tap * Cin:(tap + 1) * Cin, :] = xpf_ref[:, off:off + Ncols]

    # ---- fused depthwise + pointwise conv = one MXU matmul ------------------
    # (Cout, K*K*Cin) @ (K*K*Cin, Ncols) -> (Cout, Ncols); spatial on lanes.
    y = jnp.dot(wf_ref[...], slab_ref[...], preferred_element_type=jnp.float32)
    o_ref[0] = y.astype(o_ref.dtype)


def separable_conv2d_same(x_nchw, w_depthwise, w_pointwise,
                          kernel_size=3, stride=1, dilation=1):
    """Forward pass matching SeparableConv2d_same.

    x_nchw:      (N, Cin, H, W)
    w_depthwise: (Cin, 1, K, K)    -- PyTorch depthwise conv weight layout
    w_pointwise: (Cout, Cin, 1, 1)
    returns      (N, Cout, H_out, W_out)
    """
    N, Cin, H, W = x_nchw.shape
    Cout = w_pointwise.shape[0]
    K = kernel_size

    # fixed_padding arithmetic (same as the PyTorch helper).
    k_eff = K + (K - 1) * (dilation - 1)
    pad_total = k_eff - 1
    pad_beg = pad_total // 2
    Hp, Wp = H + pad_total, W + pad_total
    H_out = (Hp - k_eff) // stride + 1
    W_out = (Wp - k_eff) // stride + 1
    # Full-resolution (stride-1) row count computed inside the kernel; the
    # kernel keeps the padded width so every tap is a contiguous flat window.
    Hf = Hp - k_eff + 1
    Ncols = Hf * Wp

    # Fuse depthwise and pointwise weights (tiny tensors, done at XLA level):
    #   wf[co, (kh*K + kw)*Cin + ci] = w_dw[ci, 0, kh, kw] * w_pw[co, ci]
    wdw = jnp.transpose(w_depthwise[:, 0, :, :], (1, 2, 0))          # (K, K, Cin)
    wpw = jnp.transpose(w_pointwise[:, :, 0, 0], (1, 0))             # (Cin, Cout)
    wf = wdw[:, :, :, None] * wpw[None, None, :, :]                  # (K, K, Cin, Cout)
    wf = wf.reshape(K * K * Cin, Cout).T.astype(x_nchw.dtype)        # (Cout, K*K*Cin)

    # Free (bitcast) reshape: spatial flattened so the kernel gets lane-dense
    # loads without any HBM transpose/pad round trip.
    x_flat = x_nchw.reshape(N, Cin, H * W)

    kernel = functools.partial(
        _sepconv_kernel, K=K, dilation=dilation, pad_beg=pad_beg,
        H=H, W=W, Wp=Wp, Ncols=Ncols, Cin=Cin)

    flops = 2 * N * K * K * Cin * Cout * Ncols
    bytes_accessed = (x_flat.size * x_flat.dtype.itemsize
                      + wf.size * wf.dtype.itemsize
                      + N * Cout * Ncols * x_flat.dtype.itemsize)

    out_flat = pl.pallas_call(
        kernel,
        out_shape=jax.ShapeDtypeStruct((N, Cout, Ncols), x_nchw.dtype),
        grid_spec=pltpu.PrefetchScalarGridSpec(
            num_scalar_prefetch=0,
            grid=(N,),
            in_specs=[
                pl.BlockSpec((1, Cin, H * W), lambda n: (n, 0, 0)),
                pl.BlockSpec((Cout, K * K * Cin), lambda n: (0, 0)),
            ],
            out_specs=pl.BlockSpec((1, Cout, Ncols), lambda n: (n, 0, 0)),
            scratch_shapes=[
                pltpu.VMEM((Cin, Hp * Wp + pad_total), x_nchw.dtype),
                pltpu.VMEM((K * K * Cin, Ncols), x_nchw.dtype),
            ],
        ),
        compiler_params=pltpu.CompilerParams(
            dimension_semantics=("parallel",),
            vmem_limit_bytes=32 * 1024 * 1024),
        cost_estimate=pl.CostEstimate(
            flops=flops, transcendentals=0, bytes_accessed=bytes_accessed),
    )(x_flat, wf)

    # Wrapper-side view/crop (reshape is free; one cheap slice):
    #   columns with w >= W_out are padded-width garbage -> dropped,
    #   stride>1 is a single subsample here instead of strided slices in-kernel.
    out = out_flat.reshape(N, Cout, Hf, Wp)
    out = out[:, :, ::stride, ::stride][:, :, :H_out, :W_out]
    return out


# ----------------------------------------------------------------------------
# Reference (pure JAX, lax conv) for a correctness sanity check.
# ----------------------------------------------------------------------------
def _reference(x_nchw, w_depthwise, w_pointwise, kernel_size, stride, dilation):
    K = kernel_size
    k_eff = K + (K - 1) * (dilation - 1)
    pad_total = k_eff - 1
    pad_beg = pad_total // 2
    pad_end = pad_total - pad_beg
    x_pad = jnp.pad(x_nchw, ((0, 0), (0, 0),
                             (pad_beg, pad_end), (pad_beg, pad_end)))
    dn = lax.conv_dimension_numbers(x_pad.shape, w_depthwise.shape,
                                    ("NCHW", "OIHW", "NCHW"))
    y = lax.conv_general_dilated(
        x_pad, w_depthwise, window_strides=(stride, stride), padding="VALID",
        rhs_dilation=(dilation, dilation), dimension_numbers=dn,
        feature_group_count=x_nchw.shape[1],
        precision=lax.Precision.HIGHEST)
    dn2 = lax.conv_dimension_numbers(y.shape, w_pointwise.shape,
                                     ("NCHW", "OIHW", "NCHW"))
    return lax.conv_general_dilated(
        y, w_pointwise, window_strides=(1, 1), padding="VALID",
        dimension_numbers=dn2, precision=lax.Precision.HIGHEST)


if __name__ == "__main__":
    # Module config: in_channel=4, out_channel=8, kernel_size=3, stride=1,
    # dilation=1, bias=False.
    N, Cin, H, W = 2, 4, 16, 16
    Cout, K, stride, dilation = 8, 3, 1, 1

    key = jax.random.PRNGKey(0)
    kx, kd, kp = jax.random.split(key, 3)

    x = jax.random.normal(kx, (N, Cin, H, W), dtype=jnp.float32)
    # Deterministic param init (Kaiming-uniform-like bounds, same shapes as
    # the PyTorch module's conv weights).
    bound_dw = 1.0 / math.sqrt(1 * K * K)
    w_dw = jax.random.uniform(kd, (Cin, 1, K, K), dtype=jnp.float32,
                              minval=-bound_dw, maxval=bound_dw)
    bound_pw = 1.0 / math.sqrt(Cin * 1 * 1)
    w_pw = jax.random.uniform(kp, (Cout, Cin, 1, 1), dtype=jnp.float32,
                              minval=-bound_pw, maxval=bound_pw)

    out = separable_conv2d_same(x, w_dw, w_pw,
                                kernel_size=K, stride=stride, dilation=dilation)
    out = jax.block_until_ready(out)

    ref = _reference(x, w_dw, w_pw, K, stride, dilation)
    assert out.shape == ref.shape == (N, Cout, H, W)
    assert jnp.allclose(out, ref, atol=1e-4, rtol=1e-4)

    print("KERNEL_OK")
</pallas_src>

<mosaic_0001>
module attributes {stable_mosaic.version = 11 : i64} {
  func.func @_sepconv_kernel(%arg0: i32, %arg1: memref<1x4x256xf32, #tpu.memory_space<vmem>>, %arg2: memref<8x36xf32, #tpu.memory_space<vmem>>, %arg3: memref<1x8x288xf32, #tpu.memory_space<vmem>>, %arg4: memref<4x326xf32, #tpu.memory_space<vmem>>, %arg5: memref<36x288xf32, #tpu.memory_space<vmem>>) attributes {dimension_semantics = [#tpu.dimension_semantics<parallel>], iteration_bounds = array<i64: 2>, scalar_prefetch = 0 : i64, scratch_operands = 2 : i64, tpu.core_type = #tpu.core_type<tc>, window_params = [{transform_indices = @transform_0, window_bounds = array<i64: 1, 4, 256>}, {pipeline_mode = #tpu.pipeline_mode<synchronous>, transform_indices = @transform_1, window_bounds = array<i64: 8, 36>}, {transform_indices = @transform_2, window_bounds = array<i64: 1, 8, 288>}]} {
    %cst = arith.constant 0.000000e+00 : f32
    %0 = vector.broadcast %cst : f32 to vector<4x326xf32>
    %c0 = arith.constant 0 : index
    %c0_0 = arith.constant 0 : index
    %1 = vector.load %arg4[%c0, %c0_0] : memref<4x326xf32, #tpu.memory_space<vmem>>, vector<4x326xf32>
    tpu.vector_store %arg4[%c0, %c0_0], %0 {strides = array<i32>} : memref<4x326xf32, #tpu.memory_space<vmem>>, vector<4x326xf32>,
    %c0_1 = arith.constant 0 : index
    %c0_2 = arith.constant 0 : index
    %c0_3 = arith.constant 0 : index
    %2 = vector.load %arg1[%c0_1, %c0_2, %c0_3] : memref<1x4x256xf32, #tpu.memory_space<vmem>>, vector<1x4x256xf32>
    %3 = vector.shape_cast %2 : vector<1x4x256xf32> to vector<4x256xf32>
    %4 = vector.extract_strided_slice %3 {offsets = [0, 0], sizes = [4, 16], strides = [1, 1]} : vector<4x256xf32> to vector<4x16xf32>
    %c0_4 = arith.constant 0 : index
    %c19 = arith.constant 19 : index
    %5 = vector.load %arg4[%c0_4, %c19] : memref<4x326xf32, #tpu.memory_space<vmem>>, vector<4x16xf32>
    tpu.vector_store %arg4[%c0_4, %c19], %4 {strides = array<i32>} : memref<4x326xf32, #tpu.memory_space<vmem>>, vector<4x16xf32>,
    %6 = vector.extract_strided_slice %3 {offsets = [0, 16], sizes = [4, 16], strides = [1, 1]} : vector<4x256xf32> to vector<4x16xf32>
    %c0_5 = arith.constant 0 : index
    %c37 = arith.constant 37 : index
    %7 = vector.load %arg4[%c0_5, %c37] : memref<4x326xf32, #tpu.memory_space<vmem>>, vector<4x16xf32>
    tpu.vector_store %arg4[%c0_5, %c37], %6 {strides = array<i32>} : memref<4x326xf32, #tpu.memory_space<vmem>>, vector<4x16xf32>,
    %8 = vector.extract_strided_slice %3 {offsets = [0, 32], sizes = [4, 16], strides = [1, 1]} : vector<4x256xf32> to vector<4x16xf32>
    %c0_6 = arith.constant 0 : index
    %c55 = arith.constant 55 : index
    %9 = vector.load %arg4[%c0_6, %c55] : memref<4x326xf32, #tpu.memory_space<vmem>>, vector<4x16xf32>
    tpu.vector_store %arg4[%c0_6, %c55], %8 {strides = array<i32>} : memref<4x326xf32, #tpu.memory_space<vmem>>, vector<4x16xf32>,
    %10 = vector.extract_strided_slice %3 {offsets = [0, 48], sizes = [4, 16], strides = [1, 1]} : vector<4x256xf32> to vector<4x16xf32>
    %c0_7 = arith.constant 0 : index
    %c73 = arith.constant 73 : index
    %11 = vector.load %arg4[%c0_7, %c73] : memref<4x326xf32, #tpu.memory_space<vmem>>, vector<4x16xf32>
    tpu.vector_store %arg4[%c0_7, %c73], %10 {strides = array<i32>} : memref<4x326xf32, #tpu.memory_space<vmem>>, vector<4x16xf32>,
    %12 = vector.extract_strided_slice %3 {offsets = [0, 64], sizes = [4, 16], strides = [1, 1]} : vector<4x256xf32> to vector<4x16xf32>
    %c0_8 = arith.constant 0 : index
    %c91 = arith.constant 91 : index
    %13 = vector.load %arg4[%c0_8, %c91] : memref<4x326xf32, #tpu.memory_space<vmem>>, vector<4x16xf32>
    tpu.vector_store %arg4[%c0_8, %c91], %12 {strides = array<i32>} : memref<4x326xf32, #tpu.memory_space<vmem>>, vector<4x16xf32>,
    %14 = vector.extract_strided_slice %3 {offsets = [0, 80], sizes = [4, 16], strides = [1, 1]} : vector<4x256xf32> to vector<4x16xf32>
    %c0_9 = arith.constant 0 : index
    %c109 = arith.constant 109 : index
    %15 = vector.load %arg4[%c0_9, %c109] : memref<4x326xf32, #tpu.memory_space<vmem>>, vector<4x16xf32>
    tpu.vector_store %arg4[%c0_9, %c109], %14 {strides = array<i32>} : memref<4x326xf32, #tpu.memory_space<vmem>>, vector<4x16xf32>,
    %16 = vector.extract_strided_slice %3 {offsets = [0, 96], sizes = [4, 16], strides = [1, 1]} : vector<4x256xf32> to vector<4x16xf32>
    %c0_10 = arith.constant 0 : index
    %c127 = arith.constant 127 : index
    %17 = vector.load %arg4[%c0_10, %c127] : memref<4x326xf32, #tpu.memory_space<vmem>>, vector<4x16xf32>
    tpu.vector_store %arg4[%c0_10, %c127], %16 {strides = array<i32>} : memref<4x326xf32, #tpu.memory_space<vmem>>, vector<4x16xf32>,
    %18 = vector.extract_strided_slice %3 {offsets = [0, 112], sizes = [4, 16], strides = [1, 1]} : vector<4x256xf32> to vector<4x16xf32>
    %c0_11 = arith.constant 0 : index
    %c145 = arith.constant 145 : index
    %19 = vector.load %arg4[%c0_11, %c145] : memref<4x326xf32, #tpu.memory_space<vmem>>, vector<4x16xf32>
    tpu.vector_store %arg4[%c0_11, %c145], %18 {strides = array<i32>} : memref<4x326xf32, #tpu.memory_space<vmem>>, vector<4x16xf32>,
    %20 = vector.extract_strided_slice %3 {offsets = [0, 128], sizes = [4, 16], strides = [1, 1]} : vector<4x256xf32> to vector<4x16xf32>
    %c0_12 = arith.constant 0 : index
    %c163 = arith.constant 163 : index
    %21 = vector.load %arg4[%c0_12, %c163] : memref<4x326xf32, #tpu.memory_space<vmem>>, vector<4x16xf32>
    tpu.vector_store %arg4[%c0_12, %c163], %20 {strides = array<i32>} : memref<4x326xf32, #tpu.memory_space<vmem>>, vector<4x16xf32>,
    %22 = vector.extract_strided_slice %3 {offsets = [0, 144], sizes = [4, 16], strides = [1, 1]} : vector<4x256xf32> to vector<4x16xf32>
    %c0_13 = arith.constant 0 : index
    %c181 = arith.constant 181 : index
    %23 = vector.load %arg4[%c0_13, %c181] : memref<4x326xf32, #tpu.memory_space<vmem>>, vector<4x16xf32>
    tpu.vector_store %arg4[%c0_13, %c181], %22 {strides = array<i32>} : memref<4x326xf32, #tpu.memory_space<vmem>>, vector<4x16xf32>,
    %24 = vector.extract_strided_slice %3 {offsets = [0, 160], sizes = [4, 16], strides = [1, 1]} : vector<4x256xf32> to vector<4x16xf32>
    %c0_14 = arith.constant 0 : index
    %c199 = arith.constant 199 : index
    %25 = vector.load %arg4[%c0_14, %c199] : memref<4x326xf32, #tpu.memory_space<vmem>>, vector<4x16xf32>
    tpu.vector_store %arg4[%c0_14, %c199], %24 {strides = array<i32>} : memref<4x326xf32, #tpu.memory_space<vmem>>, vector<4x16xf32>,
    %26 = vector.extract_strided_slice %3 {offsets = [0, 176], sizes = [4, 16], strides = [1, 1]} : vector<4x256xf32> to vector<4x16xf32>
    %c0_15 = arith.constant 0 : index
    %c217 = arith.constant 217 : index
    %27 = vector.load %arg4[%c0_15, %c217] : memref<4x326xf32, #tpu.memory_space<vmem>>, vector<4x16xf32>
    tpu.vector_store %arg4[%c0_15, %c217], %26 {strides = array<i32>} : memref<4x326xf32, #tpu.memory_space<vmem>>, vector<4x16xf32>,
    %28 = vector.extract_strided_slice %3 {offsets = [0, 192], sizes = [4, 16], strides = [1, 1]} : vector<4x256xf32> to vector<4x16xf32>
    %c0_16 = arith.constant 0 : index
    %c235 = arith.constant 235 : index
    %29 = vector.load %arg4[%c0_16, %c235] : memref<4x326xf32, #tpu.memory_space<vmem>>, vector<4x16xf32>
    tpu.vector_store %arg4[%c0_16, %c235], %28 {strides = array<i32>} : memref<4x326xf32, #tpu.memory_space<vmem>>, vector<4x16xf32>,
    %30 = vector.extract_strided_slice %3 {offsets = [0, 208], sizes = [4, 16], strides = [1, 1]} : vector<4x256xf32> to vector<4x16xf32>
    %c0_17 = arith.constant 0 : index
    %c253 = arith.constant 253 : index
    %31 = vector.load %arg4[%c0_17, %c253] : memref<4x326xf32, #tpu.memory_space<vmem>>, vector<4x16xf32>
    tpu.vector_store %arg4[%c0_17, %c253], %30 {strides = array<i32>} : memref<4x326xf32, #tpu.memory_space<vmem>>, vector<4x16xf32>,
    %32 = vector.extract_strided_slice %3 {offsets = [0, 224], sizes = [4, 16], strides = [1, 1]} : vector<4x256xf32> to vector<4x16xf32>
    %c0_18 = arith.constant 0 : index
    %c271 = arith.constant 271 : index
    %33 = vector.load %arg4[%c0_18, %c271] : memref<4x326xf32, #tpu.memory_space<vmem>>, vector<4x16xf32>
    tpu.vector_store %arg4[%c0_18, %c271], %32 {strides = array<i32>} : memref<4x326xf32, #tpu.memory_space<vmem>>, vector<4x16xf32>,
    %34 = vector.extract_strided_slice %3 {offsets = [0, 240], sizes = [4, 16], strides = [1, 1]} : vector<4x256xf32> to vector<4x16xf32>
    %c0_19 = arith.constant 0 : index
    %c289 = arith.constant 289 : index
    %35 = vector.load %arg4[%c0_19, %c289] : memref<4x326xf32, #tpu.memory_space<vmem>>, vector<4x16xf32>
    tpu.vector_store %arg4[%c0_19, %c289], %34 {strides = array<i32>} : memref<4x326xf32, #tpu.memory_space<vmem>>, vector<4x16xf32>,
    %c0_20 = arith.constant 0 : index
    %c0_21 = arith.constant 0 : index
    %36 = vector.load %arg4[%c0_20, %c0_21] : memref<4x326xf32, #tpu.memory_space<vmem>>, vector<4x288xf32>
    %c0_22 = arith.constant 0 : index
    %c0_23 = arith.constant 0 : index
    %37 = vector.load %arg5[%c0_22, %c0_23] : memref<36x288xf32, #tpu.memory_space<vmem>>, vector<4x288xf32>
    tpu.vector_store %arg5[%c0_22, %c0_23], %36 {strides = array<i32>} : memref<36x288xf32, #tpu.memory_space<vmem>>, vector<4x288xf32>,
    %c0_24 = arith.constant 0 : index
    %c1 = arith.constant 1 : index
    %38 = vector.load %arg4[%c0_24, %c1] : memref<4x326xf32, #tpu.memory_space<vmem>>, vector<4x288xf32>
    %c4 = arith.constant 4 : index
    %c0_25 = arith.constant 0 : index
    %39 = vector.load %arg5[%c4, %c0_25] : memref<36x288xf32, #tpu.memory_space<vmem>>, vector<4x288xf32>
    tpu.vector_store %arg5[%c4, %c0_25], %38 {strides = array<i32>} : memref<36x288xf32, #tpu.memory_space<vmem>>, vector<4x288xf32>,
    %c0_26 = arith.constant 0 : index
    %c2 = arith.constant 2 : index
    %40 = vector.load %arg4[%c0_26, %c2] : memref<4x326xf32, #tpu.memory_space<vmem>>, vector<4x288xf32>
    %c8 = arith.constant 8 : index
    %c0_27 = arith.constant 0 : index
    %41 = vector.load %arg5[%c8, %c0_27] : memref<36x288xf32, #tpu.memory_space<vmem>>, vector<4x288xf32>
    tpu.vector_store %arg5[%c8, %c0_27], %40 {strides = array<i32>} : memref<36x288xf32, #tpu.memory_space<vmem>>, vector<4x288xf32>,
    %c0_28 = arith.constant 0 : index
    %c18 = arith.constant 18 : index
    %42 = vector.load %arg4[%c0_28, %c18] : memref<4x326xf32, #tpu.memory_space<vmem>>, vector<4x288xf32>
    %c12 = arith.constant 12 : index
    %c0_29 = arith.constant 0 : index
    %43 = vector.load %arg5[%c12, %c0_29] : memref<36x288xf32, #tpu.memory_space<vmem>>, vector<4x288xf32>
    tpu.vector_store %arg5[%c12, %c0_29], %42 {strides = array<i32>} : memref<36x288xf32, #tpu.memory_space<vmem>>, vector<4x288xf32>,
    %c0_30 = arith.constant 0 : index
    %c19_31 = arith.constant 19 : index
    %44 = vector.load %arg4[%c0_30, %c19_31] : memref<4x326xf32, #tpu.memory_space<vmem>>, vector<4x288xf32>
    %c16 = arith.constant 16 : index
    %c0_32 = arith.constant 0 : index
    %45 = vector.load %arg5[%c16, %c0_32] : memref<36x288xf32, #tpu.memory_space<vmem>>, vector<4x288xf32>
    tpu.vector_store %arg5[%c16, %c0_32], %44 {strides = array<i32>} : memref<36x288xf32, #tpu.memory_space<vmem>>, vector<4x288xf32>,
    %c0_33 = arith.constant 0 : index
    %c20 = arith.constant 20 : index
    %46 = vector.load %arg4[%c0_33, %c20] : memref<4x326xf32, #tpu.memory_space<vmem>>, vector<4x288xf32>
    %c20_34 = arith.constant 20 : index
    %c0_35 = arith.constant 0 : index
    %47 = vector.load %arg5[%c20_34, %c0_35] : memref<36x288xf32, #tpu.memory_space<vmem>>, vector<4x288xf32>
    tpu.vector_store %arg5[%c20_34, %c0_35], %46 {strides = array<i32>} : memref<36x288xf32, #tpu.memory_space<vmem>>, vector<4x288xf32>,
    %c0_36 = arith.constant 0 : index
    %c36 = arith.constant 36 : index
    %48 = vector.load %arg4[%c0_36, %c36] : memref<4x326xf32, #tpu.memory_space<vmem>>, vector<4x288xf32>
    %c24 = arith.constant 24 : index
    %c0_37 = arith.constant 0 : index
    %49 = vector.load %arg5[%c24, %c0_37] : memref<36x288xf32, #tpu.memory_space<vmem>>, vector<4x288xf32>
    tpu.vector_store %arg5[%c24, %c0_37], %48 {strides = array<i32>} : memref<36x288xf32, #tpu.memory_space<vmem>>, vector<4x288xf32>,
    %c0_38 = arith.constant 0 : index
    %c37_39 = arith.constant 37 : index
    %50 = vector.load %arg4[%c0_38, %c37_39] : memref<4x326xf32, #tpu.memory_space<vmem>>, vector<4x288xf32>
    %c28 = arith.constant 28 : index
    %c0_40 = arith.constant 0 : index
    %51 = vector.load %arg5[%c28, %c0_40] : memref<36x288xf32, #tpu.memory_space<vmem>>, vector<4x288xf32>
    tpu.vector_store %arg5[%c28, %c0_40], %50 {strides = array<i32>} : memref<36x288xf32, #tpu.memory_space<vmem>>, vector<4x288xf32>,
    %c0_41 = arith.constant 0 : index
    %c38 = arith.constant 38 : index
    %52 = vector.load %arg4[%c0_41, %c38] : memref<4x326xf32, #tpu.memory_space<vmem>>, vector<4x288xf32>
    %c32 = arith.constant 32 : index
    %c0_42 = arith.constant 0 : index
    %53 = vector.load %arg5[%c32, %c0_42] : memref<36x288xf32, #tpu.memory_space<vmem>>, vector<4x288xf32>
    tpu.vector_store %arg5[%c32, %c0_42], %52 {strides = array<i32>} : memref<36x288xf32, #tpu.memory_space<vmem>>, vector<4x288xf32>,
    %c0_43 = arith.constant 0 : index
    %c0_44 = arith.constant 0 : index
    %54 = vector.load %arg2[%c0_43, %c0_44] : memref<8x36xf32, #tpu.memory_space<vmem>>, vector<8x36xf32>
    %c0_45 = arith.constant 0 : index
    %c0_46 = arith.constant 0 : index
    %55 = vector.load %arg5[%c0_45, %c0_46] : memref<36x288xf32, #tpu.memory_space<vmem>>, vector<36x288xf32>
    %cst_47 = arith.constant dense<0.000000e+00> : vector<8x288xf32>
    %56 = tpu.matmul %54, %55, %cst_47 {dimension_numbers = #tpu.dot_dimension_numbers<[1], [0], [0], [1], [0, 0, 1, 1], [], []>} : vector<8x36xf32>, vector<36x288xf32>, vector<8x288xf32> -> vector<8x288xf32>
    %c0_48 = arith.constant 0 : index
    %c0_49 = arith.constant 0 : index
    %c0_50 = arith.constant 0 : index
    %57 = vector.load %arg3[%c0_48, %c0_49, %c0_50] : memref<1x8x288xf32, #tpu.memory_space<vmem>>, vector<1x8x288xf32>
    %58 = vector.shape_cast %57 : vector<1x8x288xf32> to vector<8x288xf32>
    %59 = vector.shape_cast %56 : vector<8x288xf32> to vector<1x8x288xf32>
    tpu.vector_store %arg3[%c0_48, %c0_49, %c0_50], %59 {strides = array<i32>} : memref<1x8x288xf32, #tpu.memory_space<vmem>>, vector<1x8x288xf32>,
    return
  }
  func.func @transform_0(%arg0: i32) -> (i32, i32, i32) {
    %c0_i32 = arith.constant 0 : i32
    %c0_i32_0 = arith.constant 0 : i32
    %c0_i32_1 = arith.constant 0 : i32
    return %arg0, %c0_i32, %c0_i32_0 : i32, i32, i32
  }
  func.func @transform_1(%arg0: i32) -> (i32, i32) {
    %c0_i32 = arith.constant 0 : i32
    %c0_i32_0 = arith.constant 0 : i32
    %c0_i32_1 = arith.constant 0 : i32
    return %c0_i32, %c0_i32_0 : i32, i32
  }
  func.func @transform_2(%arg0: i32) -> (i32, i32, i32) {
    %c0_i32 = arith.constant 0 : i32
    %c0_i32_0 = arith.constant 0 : i32
    %c0_i32_1 = arith.constant 0 : i32
    return %arg0, %c0_i32, %c0_i32_0 : i32, i32, i32
  }
}

</mosaic_0001>

<bundles_post_ra>
// kernel: tpu_custom_call.1
= control target key start
LH: loop header
LB: loop body
LE: loop exit
PB: predicated region body
PF: predicated region fallthrough
CT: control target
= control target key end

     0   :  { %7 = vsyncpa [#allocation5], 0  ;;  %s1281_s0 = inlined_call_operand.hbm [shape: f32[2,4,256], index: 0, kind: input, shape index: {}]   ;;  %s1282_s1 = inlined_call_operand.hbm [shape: f32[8,36], index: 1, kind: input, shape index: {}]   ;;  %s1283_s2 = inlined_call_operand.hbm [shape: f32[2,8,288], index: 2, kind: output, shape index: {}]  }
   0x1   :  { %9 = vsyncpa [#allocation5 + $0x1], 0 }
   0x2   :  { %10 = vsyncpa [#allocation8], 0 }
   0x3   :  { %11 = vsyncpa [#allocation6], 0 }
   0x4   :  { %13 = vsyncpa [#allocation6 + $0x1], 0  ;;  %s1048_s9 = smov 0   ;;  %s1050_s10 = smov 0  }
   0x5   :  { %s1052_s11 = smov 0   ;;  %s1054_s12 = smov 0  }
   0x6 LB: > { %s1069_s13 = sadd.s32 4294967295, %s1001_s12   ;;  %s729_s14 = sadd.s32 4294967294, %s1001_s12   ;;  %s1001_s12 = sphi %s1054_s12, %s1307_s12   ;;  %s997_s11 = sphi %s1052_s11, %s1306_s11   ;;  %s993_s10 = sphi %s1050_s10, %s1305_s10   ;;  %s989_s9 = sphi %s1048_s9, %s1304_s9  }
   0x7   : > { %p39_p0 = scmp.ne.s32.totalorder %s993_s10, %s989_s9  ;;  %p1284_p1 = scmp.eq.s32.totalorder %s1069_s13, 0 }
   0x8   : > { %p90_p3 = scmp.eq.s32.totalorder %s729_s14, 1  ;;  %p730_p5 = scmp.ge.s32.totalorder %s1001_s12, 1 }
   0x9   : > { %p1078_p4 = por %p1284_p1, %p39_p0  ;;  %p97_p7 = scmp.lt.s32.totalorder %s1001_s12, 3 }
   0xa   : > { %p1083_p6 = por %p90_p3, %p39_p0  ;;  %s1003_s18 = smov [#allocation7]  }
   0xb   : > { %s1287_s15 = scalar_select %p1078_p4, 1, 0 }
   0xc   : > { %s1288_s16 = scalar_select %p1083_p6, 1, 0 }
   0xd   : > { %p1088_p8 = pnand %p730_p5, %p97_p7  ;;  %s110_s19 = sshll.u32 %s1003_s18, 4  ;;  %s111_s19 = int_to_ptr.vmem [resolvable:$true] %s110_s19 }
   0xe   : > { %s1096_s20 = sadd.s32 1, %s1001_s12   ;;  %s26_s24 = sadd.s32 1, %s997_s11 }
   0xf   : > { %s1289_s17 = scalar_select %p1088_p8, 1, 0 }
  0x10   : > { %p791_p10 = pneg %p1088_p8  ;;  %s23_s22 = ssub.s32 %s1001_s12, %s1096_s20 }
  0x11   : > { %p1106_p12 = scmp.eq.s32.totalorder %s23_s22, 0  ;;  %s873_s27 = scalar_lea.hbm %s1282_s1, 128 }
  0x12   : > { %p1100_p11 = pnand %p791_p10, %p1284_p1  ;;  %p874_p0 = scmp.ne.s32.totalorder %s1282_s1, %s873_s27 }
  0x13   : > { %s1291_s23 = scalar_select %p1106_p12, 1, 0 }
  0x14   : > { %p875_p3 = pneg %p1100_p11  ;;  %p880_p10 = scmp.lt.u32.totalorder %s873_s27, %s1282_s1 }
  0x16   : > { %p876_p5 = pnand %p875_p3, %p874_p0 }
  0x18   : > { %p877_p7 = pneg %p876_p5 }
  0x1a   : > { %p882_p9 = pnand %p880_p10, %p877_p7 }
  0x1c   : > { %885 = shalt.err (!%p882_p9)
}
  0x1d   : > { %s886_s4 = scalar_lea.vmem %s111_s19, 128  ;;  %p894_p6 = scmp.lt.s32.totalorder %s111_s19, %s111_s19 }
  0x1e   : > { %p887_p1 = scmp.ne.s32.totalorder %s111_s19, %s886_s4  ;;  %p895_p4 = scmp.lt.s32.totalorder %s886_s4, %s886_s4 }
  0x20   : > { %p889_p2 = pnand %p887_p1, %p875_p3  ;;  %p896_p8 = por %p895_p4, %p894_p6 }
  0x22   : > { %p890_p13 = pneg %p889_p2 }
  0x24   : > { %p897_p12 = pnand %p896_p8, %p890_p13 }
  0x26   : > { %900 = shalt.err (!%p897_p12)
}
  0x27   : > { %794 = dma.hbm_to_vmem [thread:$0]  (!%p1100_p11), %s1282_s1, 128, %s111_s19, [#allocation8]  }
  0x28   : > { %p1292_p1 = scmp.ne.s32.totalorder %s1291_s23, 0  ;;  %p34_p2 = scmp.eq.s32.totalorder %s1001_s12, 0 }
  0x29   : > { %p1293_p4 = scmp.ne.s32.totalorder %s997_s11, %s993_s10  ;;  %p1294_p6 = scmp.eq.s32.totalorder %s1069_s13, 1 }
  0x2a   : > { %s1132_s7 = scalar_select %p1292_p1, %s997_s11, %s26_s24  }
  0x2b   : > { %p1140_p8 = por %p1294_p6, %p1293_p4  ;;  %p804_p9 = scmp.lt.s32.totalorder %s1001_s12, 2 }
  0x2c   : > { %s121_s14 = sand.u32 1, %s997_s11   ;;  %p1296_p12 = pmov %p1293_p4 }
  0x2d   : > { %s733_s18 = sshll.u32 %s121_s14, 3  ;;  %s747_s21 = sshll.u32 %s1001_s12, 7 }
  0x2e   : > { %p35_p13 = por %p34_p2, %p1296_p12  ;;  %s1153_s19 = scalar_lea.hbm %s1281_s0, %s747_s21 }
  0x2f   : > { %s125_s23 = scalar_lea.vmem [#allocation4], %s733_s18  ;;  %s122_s27 = scalar_lea.sflag [#allocation5], %s121_s14 }
  0x30   : > { %s133_s24 = sshll.u32 %s125_s23, 4  ;;  %p1155_p11 = pnand %p804_p9, %p35_p13  ;;  %s1159_s24 = int_to_ptr.vmem [resolvable:$true] %s133_s24 }
  0x31   : > { %s901_s28 = scalar_lea.hbm %s1153_s19, 128  ;;  %s906_s3 = scalar_lea.hbm %s1281_s0, 256 }
  0x32   : > { %p902_p0 = scmp.ne.s32.totalorder %s1153_s19, %s901_s28  ;;  %p903_p3 = pneg %p1155_p11 }
  0x33   : > { %p907_p10 = scmp.lt.u32.totalorder %s1153_s19, %s1281_s0  ;;  %p908_p1 = scmp.lt.u32.totalorder %s906_s3, %s901_s28 }
  0x34   : > { %p904_p5 = pnand %p903_p3, %p902_p0  ;;  %p910_p4 = scmp.lt.u32.totalorder %s901_s28, %s1153_s19 }
  0x35   : > { %p909_p2 = por %p908_p1, %p907_p10 }
  0x36   : > { %p905_p7 = pneg %p904_p5 }
  0x37   : > { %p911_p6 = por %p910_p4, %p909_p2 }
  0x39   : > { %p912_p9 = pnand %p911_p6, %p905_p7 }
  0x3b   : > { %915 = shalt.err (!%p912_p9)
}
  0x3c   : > { %s916_s6 = scalar_lea.vmem %s1159_s24, 128  ;;  %s1004_s14 = smov [#allocation4]  }
  0x3d   : > { %p917_p12 = scmp.ne.s32.totalorder %s1159_s24, %s916_s6  ;;  %s921_s18 = sshll.u32 %s1004_s14, 4  ;;  %s922_s18 = int_to_ptr.vmem [resolvable:$false] %s921_s18 }
  0x3e   : > { %s923_s21 = scalar_lea.vmem %s922_s18, 256  ;;  %p924_p5 = scmp.lt.s32.totalorder %s1159_s24, %s922_s18 }
  0x3f   : > { %p919_p13 = pnand %p917_p12, %p903_p3  ;;  %p925_p10 = scmp.lt.s32.totalorder %s923_s21, %s916_s6 }
  0x41   : > { %p920_p0 = pneg %p919_p13  ;;  %p926_p1 = por %p925_p10, %p924_p5 }
  0x43   : > { %p927_p2 = pnand %p926_p1, %p920_p0 }
  0x45   : > { %930 = shalt.err (!%p927_p2)
}
  0x46   : > { %798 = dma.hbm_to_vmem [thread:$0]  (!%p1155_p11), %s1153_s19, 128, %s1159_s24, %s122_s27  }
  0x47   : > { %p1298_p7 = scmp.ne.s32.totalorder %s1289_s17, 0 }
  0x48   : > { %s1189_s22 = sand.u32 (!%p1298_p7), 1, %s993_s10   ;;  %p1299_p3 = scmp.ne.s32.totalorder (!%p1298_p7), %s1287_s15, 0 }
  0x49   : > { %142 = sbr.rel (%p1298_p7) target bundleno = 635 (0x27b), region = 28  ;;  %s737_s25 = sshll.u32 (!%p1298_p7), %s1189_s22, 3 }
  0x4a   : > { %s145_s23 = scalar_lea.sflag (!%p1298_p7), [#allocation5], %s1189_s22  ;;  %s148_s28 = scalar_lea.vmem (!%p1298_p7), [#allocation4], %s737_s25 }
  0x50   : > { %976 = dma.done.wait (%p1299_p3), %s145_s23, 128  }
  0x51   : > { %978 = vsyncadd (%p1299_p3), %s145_s23, 4294967168  ;;  %p1300_p4 = scmp.eq.s32.totalorder %s1069_s13, 0 }
  0x53   : > { %980 = dma.done.wait (%p1300_p4), [#allocation8], 128   ;;  %p1301_p11 = pmov %p1300_p4 }
  0x54   : > { %v1005_v0 = vmov 0.0   ;;  %v176_v1 = vld [vmem:[%s148_s28] sm:$0xff]  ;;  %s1006_s17 = smov 23   ;;  %s1007_s19 = smov 19   ;;  %vm174_vm0 = vcmask 568320   ;;  %vm181_vm1 = vcmask 281752  }
  0x55   : > { %982 = vsyncadd (%p1301_p11), [#allocation8], 4294967168  ;;  %173 = vst [vmem:[#allocation2] sm:$0xff] %v1005_v0  ;;  %553 = vmatprep.mubr.f32.mxu0 %v1005_v0  ;;  %188 = vrot.lane.b32.xlu1 %v176_v1, %s1006_s17  ;;  %s1008_s24 = smov 25   ;;  %s1009_s15 = smov 21   ;;  %vm186_vm2 = vcmask 429352  }
  0x56   : > { %178 = vrot.lane.b32.xlu0 %v176_v1, %s1007_s19  ;;  %s1010_s26 = smov 27   ;;  %s1011_s27 = smov 31   ;;  %175 = vst.msk [vmem:[#allocation2 + $0x8] sm:$0xf] %vm174_vm0, %v1005_v0  ;;  %vm191_vm3 = vcmask 576952   ;;  %vm196_vm4 = vcmask 724552  }
  0x57   : > { %s1012_s29 = smov 35   ;;  %s1013_s30 = smov 29   ;;  %vm201_vm5 = vcmask 872152   ;;  %vm214_vm6 = vcmask 1044472   ;;  %vm215_vm7 = vcmask 121860   ;;  %vm211_vm8 = vcmask 252928  }
  0x58   : > { %s1014_s3 = smov 33   ;;  %s1015_s4 = smov 37   ;;  %vm206_vm9 = vcmask 1019752   ;;  %vm216_vm10 = vmor %vm215_vm7, %vm214_vm6  ;;  %vm226_vm11 = vcmask 285696   ;;  %vm221_vm12 = vcmask 265352   ;;  %vm229_vm13 = vcmask 412952  }
  0x59   : > { %193 = vrot.lane.b32.xlu1 %v176_v1, %s1008_s24  ;;  %s1016_s5 = smov 41   ;;  %s1017_s6 = smov 39   ;;  %vm234_vm14 = vcmask 302080   ;;  %vm237_vm15 = vcmask 560552   ;;  %vm250_vm0 = vcmask 334848   ;;  %vm266_vm6 = vcmask 367616  }
  0x5a   : > { %183 = vrot.lane.b32.xlu0 %v176_v1, %s1009_s15  ;;  %s1018_s14 = smov 45   ;;  %s1019_s18 = smov 43   ;;  %vm258_vm7 = vcmask 351232   ;;  %v1029_v42 = vmov 0.0|0.0  }
  0x5b   : > { %s1020_s21 = smov 47   ;;  %s1021_s25 = smov 49   ;;  %775 = vmatprep.subr.bf16.mxu1 %v1029_v42 }
  0x5c   : > { %s1022_s23 = smov 126   ;;  %s1023_s28 = smov 127  }
  0x5d   : > { %198 = vrot.lane.b32.xlu1 %v176_v1, %s1010_s26  ;;  %s1024_s17 = smov 108   ;;  %s1025_s19 = smov 110  }
  0x5e   : > { %208 = vrot.lane.b32.xlu0 %v176_v1, %s1011_s27  ;;  %s1026_s24 = smov 91   ;;  %s1027_s15 = smov 109  }
  0x5f   : > { %s1028_s26 = smov 92   ;;  %s1030_s27 = smov 90  }
  0x61   : > { %223 = vrot.lane.b32.xlu1 %v176_v1, %s1012_s29  ;;  %s781_s29 = smul.u32 24, %s1189_s22 }
  0x62   : > { %203 = vrot.lane.b32.xlu0 %v176_v1, %s1013_s30 }
  0x63   : > { %s172_s30 = scalar_lea.vmem [#allocation9], %s781_s29 }
  0x65   : > { %218 = vrot.lane.b32.xlu1 %v176_v1, %s1014_s3  ;;  %s649_s3 = sshll.u32 %s172_s30, 4  ;;  %s1234_s3 = int_to_ptr.vmem [resolvable:$true] %s649_s3 }
  0x66   : > { %231 = vrot.lane.b32.xlu0 %v176_v1, %s1015_s4  ;;  %s782_s4 = smul.u32 384, %s1069_s13  ;;  %s1032_s13 = smov [#allocation9]  }
  0x69   : > { %247 = vrot.lane.b32.xlu1 %v176_v1, %s1016_s5 }
  0x6a   : > { %239 = vrot.lane.b32.xlu0 %v176_v1, %s1017_s6 }
  0x6d   : > { %263 = vrot.lane.b32.xlu1 %v176_v1, %s1018_s14  ;;  %s1239_s14 = scalar_lea.hbm %s1283_s2, %s782_s4 }
  0x6e   : > { %255 = vrot.lane.b32.xlu0 %v176_v1, %s1019_s18  ;;  %s635_s18 = scalar_lea.sflag [#allocation6], %s1189_s22 }
  0x71   : > { %279 = vrot.lane.b32.xlu1 %v176_v1, %s1021_s25  ;;  %s935_s25 = sshll.u32 %s1032_s13, 4  ;;  %s936_s25 = int_to_ptr.vmem [resolvable:$false] %s935_s25 }
  0x72   : > { %273 = vrot.lane.b32.xlu0 %v176_v1, %s1020_s21  ;;  %s931_s21 = scalar_lea.vmem %s1234_s3, 384  ;;  %p938_p13 = scmp.lt.s32.totalorder %s1234_s3, %s936_s25 }
  0x73   : > { %p932_p6 = scmp.ne.s32.totalorder %s1234_s3, %s931_s21 }
  0x75   : > { %p933_p9 = pnand %p932_p6, %p1140_p8 }
  0x77   : > { %p934_p12 = pneg %p933_p9 }
  0xc7   : > { %v189_v2 = vpop.permute.xlu1 %188 }
  0xc8   : > { %v179_v3 = vpop.permute.xlu0 %178 }
  0xc9   : > { %182 = vst.msk [vmem:[#allocation2] sm:$0xf] %vm181_vm1, %v179_v3  ;;  %vm242_vm1 = vcmask 318464  }
  0xcb   : > { %v194_v4 = vpop.permute.xlu1 %193 }
  0xcc   : > { %v184_v5 = vpop.permute.xlu0 %183 }
  0xcd   : > { %187 = vst.msk [vmem:[#allocation2] sm:$0xf] %vm186_vm2, %v184_v5  ;;  %vm245_vm2 = vcmask 708152  }
  0xce   : > { %192 = vst.msk [vmem:[#allocation2] sm:$0xf] %vm191_vm3, %v189_v2  ;;  %vm253_vm3 = vcmask 855752  }
  0xcf   : > { %197 = vst.msk [vmem:[#allocation2] sm:$0xf] %vm196_vm4, %v194_v4  ;;  %v199_v6 = vpop.permute.xlu1 %198  ;;  %vm269_vm4 = vcmask 1044456  }
  0xd0   : > { %v209_v7 = vpop.permute.xlu0 %208  ;;  %202 = vst.msk [vmem:[#allocation2] sm:$0xf] %vm201_vm5, %v199_v6  ;;  %vm270_vm5 = vcmask 105476  }
  0xd1   : > { %v210_v8 = vrot.slane %v209_v7, 4 }
  0xd3   : > { %v224_v9 = vpop.permute.xlu1 %223  ;;  %v212_v11 = vsel %vm211_vm8, %v210_v8, %v209_v7  ;;  %vm261_vm8 = vcmask 1003352  }
  0xd4   : > { %v204_v10 = vpop.permute.xlu0 %203  ;;  %v225_v12 = vrot.slane %v224_v9, 4 }
  0xd5   : > { %207 = vst.msk [vmem:[#allocation2] sm:$0xf] %vm206_vm9, %v204_v10  ;;  %vm271_vm9 = vmor %vm270_vm5, %vm269_vm4  ;;  %vm314_vm4 = vcmask 261124   ;;  %vm430_vm5 = vcmask 744448  }
  0xd6   : > { %217 = vst.msk [vmem:[#allocation2] sm:$0xff] %vm216_vm10, %v212_v11  ;;  %v227_v15 = vsel %vm226_vm11, %v224_v9, %v225_v12  ;;  %vm277_vm10 = vcmask 248952   ;;  %vm283_vm11 = vcmask 396552  }
  0xd7   : > { %v219_v13 = vpop.permute.xlu1 %218 }
  0xd8   : > { %v232_v14 = vpop.permute.xlu0 %231  ;;  %222 = vst.msk [vmem:[#allocation2 + $0x4] sm:$0xf] %vm221_vm12, %v219_v13  ;;  %vm292_vm12 = vcmask 257024  }
  0xd9   : > { %v233_v16 = vrot.slane %v232_v14, 4  ;;  %230 = vst.msk [vmem:[#allocation2 + $0x4] sm:$0xf] %vm229_vm13, %v227_v15  ;;  %vm1031_vm13 = vmmov 0  }
  0xda   : > { %764 = vmatprep.mubr.msk.f32.mxu1 %vm1031_vm13, %v1005_v0 }
  0xdb   : > { %v235_v17 = vsel %vm234_vm14, %v232_v14, %v233_v16  ;;  %v248_v18 = vpop.permute.xlu1 %247  ;;  %vm327_vm14 = vcmask 1031168  }
  0xdc   : > { %238 = vst.msk [vmem:[#allocation2 + $0x4] sm:$0xf] %vm237_vm15, %v235_v17  ;;  %v240_v19 = vpop.permute.xlu0 %239  ;;  %v249_v20 = vrot.slane %v248_v18, 4  ;;  %vm306_vm15 = vcmask 1039360  }
  0xdd   : > { %v241_v21 = vrot.slane %v240_v19, 4 }
  0xde   : > { %v251_v22 = vsel %vm250_vm0, %v248_v18, %v249_v20  ;;  %vm348_vm0 = vcmask 900096  }
  0xdf   : > { %v243_v23 = vsel %vm242_vm1, %v240_v19, %v241_v21  ;;  %v264_v24 = vpop.permute.xlu1 %263  ;;  %vm368_vm1 = vcmask 891904  }
  0xe0   : > { %246 = vst.msk [vmem:[#allocation2 + $0x4] sm:$0xf] %vm245_vm2, %v243_v23  ;;  %v256_v25 = vpop.permute.xlu0 %255  ;;  %v265_v26 = vrot.slane %v264_v24, 4  ;;  %vm409_vm2 = vcmask 752640  }
  0xe1   : > { %254 = vst.msk [vmem:[#allocation2 + $0x4] sm:$0xf] %vm253_vm3, %v251_v22  ;;  %v257_v27 = vrot.slane %v256_v25, 4  ;;  %vm389_vm3 = vcmask 883712  }
  0xe2   : > { %v267_v28 = vsel %vm266_vm6, %v264_v24, %v265_v26  ;;  %vm450_vm6 = vcmask 736256  }
  0xe3   : > { %v259_v29 = vsel %vm258_vm7, %v256_v25, %v257_v27  ;;  %v280_v31 = vpop.permute.xlu1 %279  ;;  %vm479_vm7 = vcmask 1043456  }
  0xe4   : > { %262 = vst.msk [vmem:[#allocation2 + $0x4] sm:$0xf] %vm261_vm8, %v259_v29  ;;  %v274_v30 = vpop.permute.xlu0 %273  ;;  %v281_v33 = vrot.slane %v280_v31, 4  ;;  %vm475_vm8 = vcmask 293888  }
  0xe5   : > { %272 = vst.msk [vmem:[#allocation2 + $0x4] sm:$0xff] %vm271_vm9, %v267_v28  ;;  %v275_v32 = vrot.slane %v274_v30, 4  ;;  %vm632_vm9 = vcmask 261120  }
  0xe7   : > { %278 = vst.msk [vmem:[#allocation2 + $0x8] sm:$0xf] %vm277_vm10, %v275_v32 }
  0xe8   : > { %284 = vst.msk [vmem:[#allocation2 + $0x8] sm:$0xf] %vm283_vm11, %v281_v33 }
  0xec   : > { %v316_v34 = vld [vmem:[#allocation2] sm:$0xff] }
  0xed   : > { %321 = vrot.lane.b32.xlu1 %v316_v34, %s1022_s23  ;;  %v320_v35 = vcombine.high %v316_v34, %v316_v34  ;;  %302 = vrot.lane.b32.xlu0 %v316_v34, %s1023_s28  ;;  %290 = vst [vmem:[#allocation3] sm:$0xf] %v316_v34  ;;  %v298_v37 = vcombine.low %v316_v34, %v316_v34 }
  0xef   : > { %291 = vst [vmem:[#allocation3 + $0x8] sm:$0xf] %v320_v35  ;;  %v286_v36 = vld [vmem:[#allocation2 + $0x8] sm:$0xf] }
  0xf0   : > { %293 = vst.msk [vmem:[#allocation3 + $0x10] sm:$0xf] %vm292_vm12, %v286_v36  ;;  %v317_v38 = vld [vmem:[#allocation2 + $0x8] sm:$0xf] }
  0xf1   : > { %385 = vrot.lane.b32.xlu1 %v316_v34, %s1024_s17  ;;  %344 = vrot.lane.b32.xlu0 %v316_v34, %s1025_s19  ;;  %v358_v39 = vld [vmem:[#allocation2 + $0x8] sm:$0xf] }
  0xf2   : > { %v399_v40 = vld [vmem:[#allocation2 + $0x8] sm:$0xf] }
  0xf3   : > { %v869_v41 = vld [vmem:[#allocation2 + $0x8] ss:$0 sps:$4 sm:$0xff]  }
  0xf4   : > { %v870_v43 = vld [vmem:[#allocation2 + $0x8] ss:$0 sps:$4 sm:$0xff]  }
  0xf5   : > { %426 = vrot.lane.b32.xlu1 %v316_v34, %s1026_s24  ;;  %323 = vrot.lane.b32.xlu0 %v320_v35, %s1022_s23  ;;  %v871_v44 = vld [vmem:[#allocation2 + $0x8] ss:$0 sps:$4 sm:$0xff]  }
  0xf6   : > { %v872_v45 = vld [vmem:[#allocation2 + $0x8] ss:$0 sps:$4 sm:$0xff]  }
  0xf7   : > { %v440_v46 = vld [vmem:[#allocation2 + $0x8] sm:$0xf] }
  0xf9   : > { %362 = vrot.lane.b32.xlu1 %v316_v34, %s1027_s15  ;;  %300 = vrot.lane.b32.xlu0 %v298_v37, %s1023_s28 }
  0xfd   : > { %342 = vrot.lane.b32.xlu0 %v298_v37, %s1025_s19  ;;  %325 = vrot.lane.b32.xlu1 %v317_v38, %s1022_s23  ;;  %s937_s23 = scalar_lea.vmem %s936_s25, 768 }
  0xfe   : > { %p939_p0 = scmp.lt.s32.totalorder %s937_s23, %s931_s21 }
 0x100   : > { %p940_p5 = por %p939_p0, %p938_p13 }
 0x101   : > { %366 = vrot.lane.b32.xlu0 %v358_v39, %s1027_s15  ;;  %364 = vrot.lane.b32.xlu1 %v320_v35, %s1027_s15 }
 0x102   : > { %p941_p10 = pnand %p940_p5, %p934_p12 }
 0x105   : > { %407 = vrot.lane.b32.xlu0 %v399_v40, %s1028_s26  ;;  %405 = vrot.lane.b32.xlu1 %v320_v35, %s1028_s26 }
 0x109   : > { %383 = vrot.lane.b32.xlu0 %v298_v37, %s1024_s17  ;;  %304 = vrot.lane.b32.xlu1 %v869_v41, %s1023_s28 }
 0x10d   : > { %387 = vrot.lane.b32.xlu0 %v870_v43, %s1024_s17  ;;  %346 = vrot.lane.b32.xlu1 %v871_v44, %s1025_s19 }
 0x111   : > { %428 = vrot.lane.b32.xlu0 %v872_v45, %s1026_s24  ;;  %403 = vrot.lane.b32.xlu1 %v316_v34, %s1028_s26 }
 0x115   : > { %424 = vrot.lane.b32.xlu0 %v298_v37, %s1026_s24  ;;  %446 = vrot.lane.b32.xlu1 %v320_v35, %s1030_s27 }
 0x119   : > { %448 = vrot.lane.b32.xlu0 %v440_v46, %s1030_s27  ;;  %444 = vrot.lane.b32.xlu1 %v316_v34, %s1030_s27 }
 0x15f   : > { %v322_v47 = vpop.permute.xlu1 %321  ;;  %v303_v48 = vpop.permute.xlu0 %302 }
 0x163   : > { %v386_v49 = vpop.permute.xlu1 %385  ;;  %v345_v50 = vpop.permute.xlu0 %344 }
 0x167   : > { %v427_v51 = vpop.permute.xlu1 %426  ;;  %v324_v52 = vpop.permute.xlu0 %323 }
 0x168   : > { %v328_v53 = vsel %vm327_vm14, %v322_v47, %v324_v52 }
 0x169   : > { %333 = vst [vmem:[#allocation3 + $0x18] sm:$0xf] %v328_v53 }
 0x16b   : > { %v363_v54 = vpop.permute.xlu1 %362  ;;  %v301_v55 = vpop.permute.xlu0 %300 }
 0x16c   : > { %v307_v56 = vsel %vm306_vm15, %v301_v55, %v303_v48 }
 0x16d   : > { %312 = vst [vmem:[#allocation3] sm:$0xf0] %v307_v56 }
 0x16f   : > { %v343_v57 = vpop.permute.xlu0 %342  ;;  %v326_v58 = vpop.permute.xlu1 %325 }
 0x170   : > { %v349_v59 = vsel %vm348_vm0, %v343_v57, %v345_v50  ;;  %v329_v60 = vsel %vm327_vm14, %v324_v52, %v326_v58  ;;  %335 = vst.msk [vmem:[#allocation3 + $0x28] sm:$0xf] %vm292_vm12, %v326_v58 }
 0x171   : > { %354 = vst [vmem:[#allocation3 + $0x18] sm:$0xf0] %v349_v59  ;;  %334 = vst [vmem:[#allocation3 + $0x20] sm:$0xf] %v329_v60 }
 0x173   : > { %v367_v61 = vpop.permute.xlu0 %366  ;;  %v365_v62 = vpop.permute.xlu1 %364 }
 0x174   : > { %376 = vst.msk [vmem:[#allocation3 + $0x40] sm:$0xf] %vm292_vm12, %v367_v61  ;;  %v369_v63 = vsel %vm368_vm1, %v363_v54, %v365_v62  ;;  %v370_v1 = vsel %vm368_vm1, %v365_v62, %v367_v61  ;;  %v460_v27 = vld [vmem:[#allocation3] sm:$0xff] }
 0x175   : > { %374 = vst [vmem:[#allocation3 + $0x30] sm:$0xf] %v369_v63  ;;  %375 = vst [vmem:[#allocation3 + $0x38] sm:$0xf] %v370_v1 }
 0x177   : > { %v408_v2 = vpop.permute.xlu0 %407  ;;  %v406_v3 = vpop.permute.xlu1 %405 }
 0x178   : > { %417 = vst.msk [vmem:[#allocation3 + $0x58] sm:$0xf] %vm292_vm12, %v408_v2  ;;  %v411_v4 = vsel %vm409_vm2, %v406_v3, %v408_v2  ;;  %v463_v21 = vld [vmem:[#allocation3 + $0x18] sm:$0xff] }
 0x179   : > { %416 = vst [vmem:[#allocation3 + $0x50] sm:$0xf] %v411_v4  ;;  %v769_v28 = vpack.c.bf16 %v463_v21, %v460_v27 }
 0x17b   : > { %v384_v5 = vpop.permute.xlu0 %383  ;;  %v305_v6 = vpop.permute.xlu1 %304 }
 0x17c   : > { %v390_v7 = vsel %vm389_vm3, %v384_v5, %v386_v49  ;;  %v308_v8 = vsel %vm306_vm15, %v303_v48, %v305_v6  ;;  %315 = vst.msk [vmem:[#allocation3 + $0x10] sm:$0xf0] %vm314_vm4, %v305_v6 }
 0x17d   : > { %395 = vst [vmem:[#allocation3 + $0x30] sm:$0xf0] %v390_v7  ;;  %313 = vst [vmem:[#allocation3 + $0x8] sm:$0xf0] %v308_v8 }
 0x17f   : > { %v388_v9 = vpop.permute.xlu0 %387  ;;  %v347_v10 = vpop.permute.xlu1 %346 }
 0x180   : > { %v391_v11 = vsel %vm389_vm3, %v386_v49, %v388_v9  ;;  %397 = vst.msk [vmem:[#allocation3 + $0x40] sm:$0xf0] %vm314_vm4, %v388_v9  ;;  %v350_v12 = vsel %vm348_vm0, %v345_v50, %v347_v10  ;;  %356 = vst.msk [vmem:[#allocation3 + $0x28] sm:$0xf0] %vm314_vm4, %v347_v10 }
 0x181   : > { %396 = vst [vmem:[#allocation3 + $0x38] sm:$0xf0] %v391_v11  ;;  %355 = vst [vmem:[#allocation3 + $0x20] sm:$0xf0] %v350_v12 }
 0x183   : > { %v429_v13 = vpop.permute.xlu0 %428  ;;  %v404_v14 = vpop.permute.xlu1 %403  ;;  %v462_v19 = vld [vmem:[#allocation3 + $0x10] sm:$0xff] }
 0x184   : > { %v432_v15 = vsel %vm430_vm5, %v427_v51, %v429_v13  ;;  %438 = vst.msk [vmem:[#allocation3 + $0x58] sm:$0xf0] %vm314_vm4, %v429_v13  ;;  %v410_v16 = vsel %vm409_vm2, %v404_v14, %v406_v3  ;;  %v461_v24 = vld [vmem:[#allocation3 + $0x8] sm:$0xff]  ;;  %v466_v39 = vld [vmem:[#allocation3 + $0x30] sm:$0xff] }
 0x185   : > { %437 = vst [vmem:[#allocation3 + $0x50] sm:$0xf0] %v432_v15  ;;  %415 = vst [vmem:[#allocation3 + $0x48] sm:$0xf] %v410_v16 }
 0x187   : > { %v425_v17 = vpop.permute.xlu0 %424  ;;  %v447_v18 = vpop.permute.xlu1 %446  ;;  %v465_v20 = vld [vmem:[#allocation3 + $0x28] sm:$0xff]  ;;  %v468_v31 = vld [vmem:[#allocation3 + $0x40] sm:$0xff] }
 0x188   : > { %v431_v22 = vsel %vm430_vm5, %v425_v17, %v427_v51  ;;  %v776_v23 = vpack.c.bf16 %v465_v20, %v462_v19  ;;  %v464_v25 = vld [vmem:[#allocation3 + $0x20] sm:$0xff]  ;;  %v467_v36 = vld [vmem:[#allocation3 + $0x38] sm:$0xff] }
 0x189   : > { %436 = vst [vmem:[#allocation3 + $0x48] sm:$0xf0] %v431_v22  ;;  %v767_v26 = vpack.c.bf16 %v464_v25, %v461_v24 }
 0x18a   : > { %777 = vmatpush3.bf16.msra.mxu1 %v776_v23 }
 0x18b   : > { %v449_v29 = vpop.permute.xlu0 %448  ;;  %768 = vmatprep.subr.bf16.mxu0 %v767_v26  ;;  %v445_v30 = vpop.permute.xlu1 %444  ;;  %778 = vmatprep.subr.bf16.mxu1 %v1029_v42  ;;  %v471_v32 = vld [vmem:[#allocation3 + $0x58] sm:$0xff]  ;;  %v459_v42 = vld [vmem:[#allocation7] sm:$0xff] }
 0x18c   : > { %v452_v33 = vsel %vm450_vm6, %v447_v18, %v449_v29  ;;  %458 = vst.msk [vmem:[#allocation3 + $0x70] sm:$0xf] %vm292_vm12, %v449_v29  ;;  %v451_v34 = vsel %vm450_vm6, %v445_v30, %v447_v18  ;;  %770 = vmatpush1.bf16.msra.mxu0 %v769_v28  ;;  %v779_v35 = vpack.c.bf16 %v471_v32, %v468_v31  ;;  %v470_v37 = vld [vmem:[#allocation3 + $0x50] sm:$0xff] }
 0x18d   : > { %457 = vst [vmem:[#allocation3 + $0x68] sm:$0xf] %v452_v33  ;;  %456 = vst [vmem:[#allocation3 + $0x60] sm:$0xf] %v451_v34  ;;  %v771_v38 = vpack.c.bf16 %v470_v37, %v467_v36 }
 0x18e   : > { %780 = vmatpush3.bf16.msra.mxu1 %v779_v35 }
 0x18f   : > { %772 = vmatprep.subr.bf16.mxu0 %v771_v38  ;;  %762 = vmatprep.subr.mxu1 %v1005_v0 }
 0x190   : > { %v469_v40 = vld [vmem:[#allocation3 + $0x48] sm:$0xff] }
 0x191   : > { %v773_v41 = vpack.c.bf16 %v469_v40, %v466_v39 }
 0x193   : > { %774 = vmatpush1.bf16.msra.mxu0 %v773_v41  ;;  %v474_v43 = vld [vmem:[#allocation3 + $0x70] sm:$0xf] }
 0x194   : > { %763 = vmatpush3.msk.msra.mxu1 %vm479_vm7, %v474_v43  ;;  %v473_v44 = vld [vmem:[#allocation3 + $0x68] sm:$0xf]  ;;  %v472_v45 = vld [vmem:[#allocation3 + $0x60] sm:$0xf] }
 0x195   : > { %739 = vmatprep.subr.msk.mxu0 %vm479_vm7, %v473_v44  ;;  %765 = vmatmul.mubr.msk.f32.vlgmr.msra.gmra.mrb[0].mxu1 %vm475_vm8, %v459_v42 }
 0x197   : > { %740 = vmatpush1.msk.msra.mxu0 %vm479_vm7, %v472_v45 }
 0x198   : > { %741 = vmatmul.mubr.msk.f32.vlgmr.msra.gmra.mrb[0].mxu0 %vm475_vm8, %v459_v42 }
 0x268   : > { %v626_v0 = vpop.f32.mrb[0].mxu1 }
 0x269   : > { %633 = vst.msk [vmem:[%s172_s30 + $0x10] sm:$0xff] %vm632_vm9, %v626_v0  ;;  %v766_v46 = vpop.f32.mrb[1].mxu1 }
 0x26b   : > { %v555_v47 = vpop.f32.mrb[0].mxu0 }
 0x26c   : > { %630 = vst [vmem:[%s172_s30] sm:$0xff] %v555_v47  ;;  %v557_v48 = vpop.f32.mrb[1].mxu0 }
 0x26d   : > { %631 = vst [vmem:[%s172_s30 + $0x8] sm:$0xff] %v557_v48 }
 0x26e   : > { %944 = shalt.err (!%p941_p10)
}
 0x26f   : > { %s945_s22 = scalar_lea.hbm %s1239_s14, 384  ;;  %s949_s19 = scalar_lea.hbm %s1283_s2, 768 }
 0x270   : > { %p946_p1 = scmp.ne.s32.totalorder %s1239_s14, %s945_s22  ;;  %p950_p3 = scmp.lt.u32.totalorder %s1239_s14, %s1283_s2 }
 0x271   : > { %p951_p4 = scmp.lt.u32.totalorder %s949_s19, %s945_s22  ;;  %p953_p6 = scmp.lt.u32.totalorder %s945_s22, %s1239_s14 }
 0x272   : > { %p947_p2 = pnand %p946_p1, %p1140_p8 }
 0x273   : > { %p952_p11 = por %p951_p4, %p950_p3 }
 0x274   : > { %p948_p7 = pneg %p947_p2 }
 0x275   : > { %p954_p9 = por %p953_p6, %p952_p11 }
 0x277   : > { %p955_p12 = pnand %p954_p9, %p948_p7 }
 0x279   : > { %958 = shalt.err (!%p955_p12)
}
 0x27a   : > { %789 = dma.vmem_to_hbm [thread:$0]  (%p1140_p8), %s1234_s3, 384, %s1239_s14, %s635_s18  }
 0x27b PF: > { %s661_s26 = sand.u32 1, %s989_s9   ;;  %p1302_p13 = scmp.ne.s32.totalorder %s1288_s16, 0 }
 0x27c   : > { %p1303_p0 = scmp.ge.s32.totalorder %s1001_s12, 2  ;;  %s662_s27 = scalar_lea.sflag [#allocation6], %s661_s26 }
 0x27e   : > { %p800_p5 = pnand %p1303_p0, %p1302_p13 }
 0x280   : > { %984 = dma.done.wait (!%p800_p5), %s662_s27, 384  }
 0x281   : > { %986 = vsyncadd (!%p800_p5), %s662_s27, 4294966912  ;;  %p16_p10 = scmp.ge.s32.totalorder %s1096_s20, 4   ;;  %s1304_s9 = smov %s993_s10 }
 0x282   : > { %s1305_s10 = smov %s997_s11  ;;  %s1306_s11 = smov %s1132_s7 }
 0x283   : > { %s1307_s12 = smov %s1096_s20  ;;  %18 = sbr.rel (!%p16_p10) target bundleno = 6 (0x6), region = 77 }
 0x28a   :  { %667 = vsyncpa [#allocation5], 1 }
 0x28b   :  { %669 = vsyncpa [#allocation5 + $0x1], 1 }
 0x28c   :  { %670 = vsyncpa [#allocation8], 1 }
 0x28d   :  { %671 = vsyncpa [#allocation6], 1 }
 0x28e   :  { %673 = vsyncpa [#allocation6 + $0x1], 1 }

</bundles_post_ra>
